<compile_context>
chip_gen: v7x
topology: tpu7x:2x2x1
jax: 0.10.0
libtpu: 0.0.40
codegen_flags: <defaults>
</compile_context>

<pallas_src>
import functools
import itertools

import numpy as np
import jax
import jax.numpy as jnp
from jax.experimental import pallas as pl
from jax.experimental.pallas import tpu as pltpu


# ----------------------------------------------------------------------------
# Parameter / constant construction (mirrors the PyTorch __init__, plain numpy)
# ----------------------------------------------------------------------------
def build_output_control_points(num_control_points, margins):
    margin_x, margin_y = margins
    n_side = num_control_points // 2
    ctrl_pts_x = np.linspace(margin_x, 1.0 - margin_x, n_side)
    ctrl_pts_y_top = np.ones(n_side) * margin_y
    ctrl_pts_y_bottom = np.ones(n_side) * (1.0 - margin_y)
    ctrl_pts_top = np.stack([ctrl_pts_x, ctrl_pts_y_top], axis=1)
    ctrl_pts_bottom = np.stack([ctrl_pts_x, ctrl_pts_y_bottom], axis=1)
    return np.concatenate([ctrl_pts_top, ctrl_pts_bottom], axis=0).astype(np.float64)


def compute_partial_repr(input_points, control_points):
    diff = input_points[:, None, :] - control_points[None, :, :]
    dist = (diff * diff).sum(-1)
    with np.errstate(divide="ignore", invalid="ignore"):
        repr_m = 0.5 * dist * np.log(dist)
    # PyTorch masked_fill_ of NaN (0 * log 0) with 0
    repr_m = np.where(np.isnan(repr_m), 0.0, repr_m)
    return repr_m


def build_tps_transform_matrix(output_image_size, num_control_points, margins):
    """A_nt = (target_coordinate_repr @ inverse_kernel)[:, :N].T  as (N, HW_out) f32.

    Dropping the last 3 columns of A is exact because they only multiply the
    all-zero padding rows of Y = [source_control_points; zeros(3, 2)].
    """
    H_out, W_out = output_image_size
    N = num_control_points
    tcp = build_output_control_points(N, margins)                       # (N, 2)

    forward_kernel = np.zeros((N + 3, N + 3), dtype=np.float64)
    forward_kernel[:N, :N] = compute_partial_repr(tcp, tcp)
    forward_kernel[:N, -3] = 1.0
    forward_kernel[-3, :N] = 1.0
    forward_kernel[:N, -2:] = tcp
    forward_kernel[-2:, :N] = tcp.T
    inverse_kernel = np.linalg.inv(forward_kernel)                      # (N+3, N+3)

    HW = H_out * W_out
    target_coordinate = np.array(
        list(itertools.product(range(H_out), range(W_out))), dtype=np.float64)
    Y = target_coordinate[:, 0:1] / (H_out - 1)
    X = target_coordinate[:, 1:2] / (W_out - 1)
    target_coordinate = np.concatenate([X, Y], axis=1)                  # (HW, 2)
    tcpr = compute_partial_repr(target_coordinate, tcp)                 # (HW, N)
    target_coordinate_repr = np.concatenate(
        [tcpr, np.ones((HW, 1)), target_coordinate], axis=1)            # (HW, N+3)

    a_mat = target_coordinate_repr @ inverse_kernel                     # (HW, N+3) f64
    return jnp.asarray(a_mat[:, :N].T, dtype=jnp.float32)               # (N, HW)


# ----------------------------------------------------------------------------
# Pallas kernel: bilinear sampling of one (batch, HW_out-tile) via separable
# row/column weights.  src is already in TPS coordinates (computed in XLA).
# ----------------------------------------------------------------------------
def _bilinear_sample_kernel(src_ref, img_ref, out_ref, *, c, h_in, w_in, tile):
    # src_ref: (1, 2, T)        row 0 = x, row 1 = y  (un-clamped TPS coords)
    # img_ref: (1, C*W_in, H_in) image with H_in as the contraction (minor) dim
    # out_ref: (1, C, T)
    src = src_ref[0]                                                    # (2, T)

    # align_corners=True: pixel = clip(src, 0, 1) * (dim - 1)
    gx = jnp.clip(src[0:1, :], 0.0, 1.0) * (w_in - 1)                   # (1, T)
    gy = jnp.clip(src[1:2, :], 0.0, 1.0) * (h_in - 1)                   # (1, T)
    x0f = jnp.floor(gx)
    y0f = jnp.floor(gy)
    x0 = jnp.clip(x0f.astype(jnp.int32), 0, w_in - 1)
    y0 = jnp.clip(y0f.astype(jnp.int32), 0, h_in - 1)
    x1 = jnp.minimum(x0 + 1, w_in - 1)
    y1 = jnp.minimum(y0 + 1, h_in - 1)
    wx1 = gx - x0f
    wx0 = 1.0 - wx1
    wy1 = gy - y0f
    wy0 = 1.0 - wy1

    # Separable selection matrices (transposed, lane-dense), 2 nonzeros per
    # column.  Entries are ADDED so the clamped edge case (x1 == x0, y1 == y0)
    # keeps a total weight of 1 — do not change this to a select.
    row_h = jax.lax.broadcasted_iota(jnp.int32, (h_in, tile), 0)
    sy_t = jnp.where(row_h == y0, wy0, 0.0) + jnp.where(row_h == y1, wy1, 0.0)
    row_w = jax.lax.broadcasted_iota(jnp.int32, (w_in, tile), 0)
    sx_t = jnp.where(row_w == x0, wx0, 0.0) + jnp.where(row_w == x1, wx1, 0.0)

    # MXU: contract the image's H axis against the y-weights.
    # (C*W_in, H_in) @ (H_in, T) -> (C*W_in, T)
    tmp = jnp.dot(img_ref[0], sy_t,
                  preferred_element_type=jnp.float32,
                  precision=jax.lax.Precision.HIGHEST)

    # Apply x-weights and reduce over W_in on the VPU/XLU (W_in is a multiple
    # of 8 here, so the reshape is a clean sublane-tile split).
    tmp = tmp.reshape(c, w_in, tile) * sx_t[None, :, :]                 # (C, W_in, T)
    out_ref[0] = jnp.sum(tmp, axis=1).astype(out_ref.dtype)             # (C, T)


# ----------------------------------------------------------------------------
# Generation-aware, lane-aligned tile selection
# ----------------------------------------------------------------------------
def _pick_tile(hw_out, c, h_in, w_in):
    try:
        vmem = pltpu.get_tpu_info().vmem_capacity_bytes
    except Exception:
        vmem = 64 << 20                      # conservative (v7x-sized) fallback
    # Stay well inside the scoped-VMEM default; reserve the double-buffered
    # per-batch image block first.
    budget = max(vmem // 8 - 2 * c * w_in * h_in * 4, 1 << 20)
    # f32 bytes per output column: double-buffered src/out blocks + in-kernel
    # intermediates (sy, sx, y-contraction, weighted product, result).
    per_col = 4 * (2 * (2 + c) + h_in + w_in + 2 * c * w_in + c)
    # Candidates: multiples of 128 dividing hw_out (largest first); a
    # full-extent block is always layout-legal if there is none.
    cands = [t for t in range(128 * (hw_out // 128), 0, -128) if hw_out % t == 0]
    if not cands:
        return hw_out
    for t in cands:
        if t * per_col <= budget:
            return t
    return cands[-1]                         # smallest lane-aligned divisor (128)


# ----------------------------------------------------------------------------
# Wrapper (forward pass of TPSSpatialTransformer)
# ----------------------------------------------------------------------------
def tps_spatial_transformer(x_nchw, source_control_points, a_nt, output_image_size):
    B, C, H_in, W_in = x_nchw.shape
    H_out, W_out = output_image_size
    HW_out = H_out * W_out

    # --- TPS coordinate transform, hoisted to XLA (tiny; ~2*HW_out floats) ----
    y_t = jnp.swapaxes(source_control_points.astype(jnp.float32), 1, 2)  # (B, 2, N)
    src_t = jnp.einsum("bcn,np->bcp", y_t, a_nt,
                       precision=jax.lax.Precision.HIGHEST)              # (B, 2, HW_out)

    # --- Image laid out with H_in as the contraction (minor) dim --------------
    img_r = jnp.transpose(x_nchw.astype(jnp.float32), (0, 1, 3, 2)).reshape(
        B, C * W_in, H_in)                                               # (B, C*W_in, H_in)

    T = _pick_tile(HW_out, C, H_in, W_in)
    grid = (B, HW_out // T)     # batch outer => image block index constant on the inner axis

    kern = functools.partial(_bilinear_sample_kernel,
                             c=C, h_in=H_in, w_in=W_in, tile=T)

    out_flat = pl.pallas_call(
        kern,
        out_shape=jax.ShapeDtypeStruct((B, C, HW_out), jnp.float32),
        grid=grid,
        in_specs=[
            pl.BlockSpec((1, 2, T), lambda b, t: (b, 0, t)),             # src tile
            pl.BlockSpec((1, C * W_in, H_in), lambda b, t: (b, 0, 0)),   # image (per batch)
        ],
        out_specs=pl.BlockSpec((1, C, T), lambda b, t: (b, 0, t)),
        compiler_params=pltpu.CompilerParams(
            dimension_semantics=("parallel", "parallel")),
    )(src_t, img_r)

    output_maps = out_flat.reshape(B, C, H_out, W_out)                   # NCHW, like PyTorch
    source_coordinate = jnp.swapaxes(src_t, 1, 2)                        # (B, HW_out, 2), un-clamped
    return output_maps, source_coordinate
    # TODO(synk): the `canvas` branch of grid_sample is unused in this module
    # (canvas=None) and is intentionally not implemented.


# ----------------------------------------------------------------------------
# Pure-JAX reference (correctness check of the sampling kernel)
# ----------------------------------------------------------------------------
def tps_reference(x_nchw, scp, a_nt, output_image_size):
    B, C, H_in, W_in = x_nchw.shape
    y_t = jnp.swapaxes(scp.astype(jnp.float32), 1, 2)                    # (B, 2, N)
    src_t = jnp.einsum("bcn,np->bcp", y_t, a_nt,
                       precision=jax.lax.Precision.HIGHEST)              # (B, 2, HW)
    src = jnp.swapaxes(src_t, 1, 2)                                      # (B, HW, 2)

    gx = jnp.clip(src[..., 0], 0.0, 1.0) * (W_in - 1)
    gy = jnp.clip(src[..., 1], 0.0, 1.0) * (H_in - 1)
    x0f, y0f = jnp.floor(gx), jnp.floor(gy)
    x0 = jnp.clip(x0f.astype(jnp.int32), 0, W_in - 1)
    y0 = jnp.clip(y0f.astype(jnp.int32), 0, H_in - 1)
    x1 = jnp.clip(x0 + 1, 0, W_in - 1)
    y1 = jnp.clip(y0 + 1, 0, H_in - 1)
    wx1, wy1 = gx - x0f, gy - y0f
    wx0, wy0 = 1.0 - wx1, 1.0 - wy1

    def samp(img, yy, xx):                                               # img (C, H, W)
        return img[:, yy, xx]                                            # (C, HW)

    xf = x_nchw.astype(jnp.float32)
    v00 = jax.vmap(samp)(xf, y0, x0)
    v01 = jax.vmap(samp)(xf, y0, x1)
    v10 = jax.vmap(samp)(xf, y1, x0)
    v11 = jax.vmap(samp)(xf, y1, x1)
    w00 = (wy0 * wx0)[:, None, :]
    w01 = (wy0 * wx1)[:, None, :]
    w10 = (wy1 * wx0)[:, None, :]
    w11 = (wy1 * wx1)[:, None, :]
    out = v00 * w00 + v01 * w01 + v10 * w10 + v11 * w11                  # (B, C, HW)
    H_out, W_out = output_image_size
    return out.reshape(B, C, H_out, W_out), src


# ----------------------------------------------------------------------------
if __name__ == "__main__":
    # Module config
    output_image_size = (16, 16)
    num_control_points = 8
    margins = (0.05, 0.05)

    # Deterministic constants from __init__ (tcr @ invk folded on host, f64)
    a_nt = build_tps_transform_matrix(output_image_size, num_control_points, margins)

    # Deterministic example inputs
    key = jax.random.PRNGKey(0)
    k1, k2 = jax.random.split(key)
    B, C, H_in, W_in = 2, 4, 16, 16
    x = jax.random.normal(k1, (B, C, H_in, W_in), dtype=jnp.float32)

    # source control points: target control points + small perturbation, in [0, 1]
    tcp = jnp.asarray(
        build_output_control_points(num_control_points, margins), dtype=jnp.float32)
    noise = 0.05 * jax.random.uniform(k2, (B, num_control_points, 2),
                                      dtype=jnp.float32, minval=-1.0, maxval=1.0)
    source_control_points = jnp.clip(tcp[None] + noise, 0.0, 1.0)

    out_maps, src_coord = tps_spatial_transformer(
        x, source_control_points, a_nt, output_image_size)
    out_maps = jax.block_until_ready(out_maps)
    src_coord = jax.block_until_ready(src_coord)

    # Correctness check against pure-JAX reference
    ref_maps, ref_coord = tps_reference(
        x, source_control_points, a_nt, output_image_size)
    np.testing.assert_allclose(np.asarray(src_coord), np.asarray(ref_coord),
                               rtol=1e-4, atol=1e-4)
    np.testing.assert_allclose(np.asarray(out_maps), np.asarray(ref_maps),
                               rtol=1e-4, atol=1e-4)

    print("KERNEL_OK")
</pallas_src>

<mosaic_0001>
module attributes {stable_mosaic.version = 11 : i64} {
  func.func @_bilinear_sample_kernel(%arg0: i32, %arg1: i32, %arg2: memref<1x2x256xf32, #tpu.memory_space<vmem>>, %arg3: memref<1x64x16xf32, #tpu.memory_space<vmem>>, %arg4: memref<1x4x256xf32, #tpu.memory_space<vmem>>) attributes {dimension_semantics = [#tpu.dimension_semantics<parallel>, #tpu.dimension_semantics<parallel>], iteration_bounds = array<i64: 2, 1>, scalar_prefetch = 0 : i64, scratch_operands = 0 : i64, tpu.core_type = #tpu.core_type<tc>, window_params = [{transform_indices = @transform_0, window_bounds = array<i64: 1, 2, 256>}, {transform_indices = @transform_1, window_bounds = array<i64: 1, 64, 16>}, {transform_indices = @transform_2, window_bounds = array<i64: 1, 4, 256>}]} {
    %c0 = arith.constant 0 : index
    %c0_0 = arith.constant 0 : index
    %c0_1 = arith.constant 0 : index
    %0 = vector.load %arg2[%c0, %c0_0, %c0_1] : memref<1x2x256xf32, #tpu.memory_space<vmem>>, vector<1x2x256xf32>
    %1 = vector.shape_cast %0 : vector<1x2x256xf32> to vector<2x256xf32>
    %2 = vector.extract_strided_slice %1 {offsets = [0, 0], sizes = [1, 256], strides = [1, 1]} : vector<2x256xf32> to vector<1x256xf32>
    %cst = arith.constant 0.000000e+00 : f32
    %cst_2 = arith.constant 1.000000e+00 : f32
    %3 = vector.broadcast %cst : f32 to vector<1x256xf32>
    %4 = arith.maximumf %3, %2 : vector<1x256xf32>
    %5 = vector.broadcast %cst_2 : f32 to vector<1x256xf32>
    %6 = arith.minimumf %5, %4 : vector<1x256xf32>
    %cst_3 = arith.constant 1.500000e+01 : f32
    %7 = vector.broadcast %cst_3 : f32 to vector<1x256xf32>
    %8 = arith.mulf %6, %7 : vector<1x256xf32>
    %9 = vector.extract_strided_slice %1 {offsets = [1, 0], sizes = [1, 256], strides = [1, 1]} : vector<2x256xf32> to vector<1x256xf32>
    %cst_4 = arith.constant 0.000000e+00 : f32
    %cst_5 = arith.constant 1.000000e+00 : f32
    %10 = vector.broadcast %cst_4 : f32 to vector<1x256xf32>
    %11 = arith.maximumf %10, %9 : vector<1x256xf32>
    %12 = vector.broadcast %cst_5 : f32 to vector<1x256xf32>
    %13 = arith.minimumf %12, %11 : vector<1x256xf32>
    %cst_6 = arith.constant 1.500000e+01 : f32
    %14 = vector.broadcast %cst_6 : f32 to vector<1x256xf32>
    %15 = arith.mulf %13, %14 : vector<1x256xf32>
    %16 = math.floor %8 : vector<1x256xf32>
    %17 = math.floor %15 : vector<1x256xf32>
    %18 = arith.fptosi %16 : vector<1x256xf32> to vector<1x256xi32>
    %c0_i32 = arith.constant 0 : i32
    %c15_i32 = arith.constant 15 : i32
    %19 = vector.broadcast %c0_i32 : i32 to vector<1x256xi32>
    %20 = arith.maxsi %19, %18 : vector<1x256xi32>
    %21 = vector.broadcast %c15_i32 : i32 to vector<1x256xi32>
    %22 = arith.minsi %21, %20 : vector<1x256xi32>
    %23 = arith.fptosi %17 : vector<1x256xf32> to vector<1x256xi32>
    %c0_i32_7 = arith.constant 0 : i32
    %c15_i32_8 = arith.constant 15 : i32
    %24 = vector.broadcast %c0_i32_7 : i32 to vector<1x256xi32>
    %25 = arith.maxsi %24, %23 : vector<1x256xi32>
    %26 = vector.broadcast %c15_i32_8 : i32 to vector<1x256xi32>
    %27 = arith.minsi %26, %25 : vector<1x256xi32>
    %c1_i32 = arith.constant 1 : i32
    %28 = vector.broadcast %c1_i32 : i32 to vector<1x256xi32>
    %29 = arith.addi %22, %28 : vector<1x256xi32>
    %c15_i32_9 = arith.constant 15 : i32
    %30 = vector.broadcast %c15_i32_9 : i32 to vector<1x256xi32>
    %31 = arith.minsi %29, %30 : vector<1x256xi32>
    %c1_i32_10 = arith.constant 1 : i32
    %32 = vector.broadcast %c1_i32_10 : i32 to vector<1x256xi32>
    %33 = arith.addi %27, %32 : vector<1x256xi32>
    %c15_i32_11 = arith.constant 15 : i32
    %34 = vector.broadcast %c15_i32_11 : i32 to vector<1x256xi32>
    %35 = arith.minsi %33, %34 : vector<1x256xi32>
    %36 = arith.subf %8, %16 : vector<1x256xf32>
    %cst_12 = arith.constant 1.000000e+00 : f32
    %37 = vector.broadcast %cst_12 : f32 to vector<1x256xf32>
    %38 = arith.subf %37, %36 : vector<1x256xf32>
    %39 = arith.subf %15, %17 : vector<1x256xf32>
    %cst_13 = arith.constant 1.000000e+00 : f32
    %40 = vector.broadcast %cst_13 : f32 to vector<1x256xf32>
    %41 = arith.subf %40, %39 : vector<1x256xf32>
    %42 = tpu.iota {dimensions = array<i32: 0>} : vector<16x256xi32>
    %43 = vector.broadcast %27 : vector<1x256xi32> to vector<16x256xi32>
    %44 = arith.cmpi eq, %42, %43 : vector<16x256xi32>
    %cst_14 = arith.constant 0.000000e+00 : f32
    %45 = vector.shape_cast %41 : vector<1x256xf32> to vector<1x256xf32>
    %46 = vector.broadcast %45 : vector<1x256xf32> to vector<16x256xf32>
    %47 = vector.broadcast %cst_14 : f32 to vector<16x256xf32>
    %48 = arith.select %44, %46, %47 : vector<16x256xi1>, vector<16x256xf32>
    %49 = vector.broadcast %35 : vector<1x256xi32> to vector<16x256xi32>
    %50 = arith.cmpi eq, %42, %49 : vector<16x256xi32>
    %cst_15 = arith.constant 0.000000e+00 : f32
    %51 = vector.shape_cast %39 : vector<1x256xf32> to vector<1x256xf32>
    %52 = vector.broadcast %51 : vector<1x256xf32> to vector<16x256xf32>
    %53 = vector.broadcast %cst_15 : f32 to vector<16x256xf32>
    %54 = arith.select %50, %52, %53 : vector<16x256xi1>, vector<16x256xf32>
    %55 = arith.addf %48, %54 : vector<16x256xf32>
    %56 = tpu.iota {dimensions = array<i32: 0>} : vector<16x256xi32>
    %57 = vector.broadcast %22 : vector<1x256xi32> to vector<16x256xi32>
    %58 = arith.cmpi eq, %56, %57 : vector<16x256xi32>
    %cst_16 = arith.constant 0.000000e+00 : f32
    %59 = vector.shape_cast %38 : vector<1x256xf32> to vector<1x256xf32>
    %60 = vector.broadcast %59 : vector<1x256xf32> to vector<16x256xf32>
    %61 = vector.broadcast %cst_16 : f32 to vector<16x256xf32>
    %62 = arith.select %58, %60, %61 : vector<16x256xi1>, vector<16x256xf32>
    %63 = vector.broadcast %31 : vector<1x256xi32> to vector<16x256xi32>
    %64 = arith.cmpi eq, %56, %63 : vector<16x256xi32>
    %cst_17 = arith.constant 0.000000e+00 : f32
    %65 = vector.shape_cast %36 : vector<1x256xf32> to vector<1x256xf32>
    %66 = vector.broadcast %65 : vector<1x256xf32> to vector<16x256xf32>
    %67 = vector.broadcast %cst_17 : f32 to vector<16x256xf32>
    %68 = arith.select %64, %66, %67 : vector<16x256xi1>, vector<16x256xf32>
    %69 = arith.addf %62, %68 : vector<16x256xf32>
    %c0_18 = arith.constant 0 : index
    %c0_19 = arith.constant 0 : index
    %c0_20 = arith.constant 0 : index
    %70 = vector.load %arg3[%c0_18, %c0_19, %c0_20] : memref<1x64x16xf32, #tpu.memory_space<vmem>>, vector<1x64x16xf32>
    %71 = vector.shape_cast %70 : vector<1x64x16xf32> to vector<64x16xf32>
    %cst_21 = arith.constant dense<0.000000e+00> : vector<64x256xf32>
    %72 = tpu.matmul %71, %55, %cst_21 {dimension_numbers = #tpu.dot_dimension_numbers<[1], [0], [0], [1], [0, 0, 1, 1], [], []>, precision = #tpu.contract_precision<fp32>} : vector<64x16xf32>, vector<16x256xf32>, vector<64x256xf32> -> vector<64x256xf32>
    %73 = vector.shape_cast %72 : vector<64x256xf32> to vector<4x16x256xf32>
    %74 = vector.shape_cast %69 : vector<16x256xf32> to vector<1x16x256xf32>
    %75 = vector.broadcast %74 : vector<1x16x256xf32> to vector<4x16x256xf32>
    %76 = arith.mulf %73, %75 : vector<4x16x256xf32>
    %cst_22 = arith.constant dense<0.000000e+00> : vector<4x256xf32>
    %77 = vector.multi_reduction <add>, %76, %cst_22 [1] : vector<4x16x256xf32> to vector<4x256xf32>
    %c0_23 = arith.constant 0 : index
    %c0_24 = arith.constant 0 : index
    %c0_25 = arith.constant 0 : index
    %78 = vector.load %arg4[%c0_23, %c0_24, %c0_25] : memref<1x4x256xf32, #tpu.memory_space<vmem>>, vector<1x4x256xf32>
    %79 = vector.shape_cast %78 : vector<1x4x256xf32> to vector<4x256xf32>
    %80 = vector.shape_cast %77 : vector<4x256xf32> to vector<1x4x256xf32>
    tpu.vector_store %arg4[%c0_23, %c0_24, %c0_25], %80 {strides = array<i32>} : memref<1x4x256xf32, #tpu.memory_space<vmem>>, vector<1x4x256xf32>,
    return
  }
  func.func @transform_0(%arg0: i32, %arg1: i32) -> (i32, i32, i32) {
    %c0_i32 = arith.constant 0 : i32
    %c0_i32_0 = arith.constant 0 : i32
    return %arg0, %c0_i32, %arg1 : i32, i32, i32
  }
  func.func @transform_1(%arg0: i32, %arg1: i32) -> (i32, i32, i32) {
    %c0_i32 = arith.constant 0 : i32
    %c0_i32_0 = arith.constant 0 : i32
    %c0_i32_1 = arith.constant 0 : i32
    return %arg0, %c0_i32, %c0_i32_0 : i32, i32, i32
  }
  func.func @transform_2(%arg0: i32, %arg1: i32) -> (i32, i32, i32) {
    %c0_i32 = arith.constant 0 : i32
    %c0_i32_0 = arith.constant 0 : i32
    return %arg0, %c0_i32, %arg1 : i32, i32, i32
  }
}

</mosaic_0001>

<bundles_post_ra>
// kernel: tpu_custom_call.1
= control target key start
LH: loop header
LB: loop body
LE: loop exit
PB: predicated region body
PF: predicated region fallthrough
CT: control target
= control target key end

     0   :  { %7 = vsyncpa [#allocation3], 0  ;;  %s2098_s0 = inlined_call_operand.vmem [shape: f32[2,2,256], index: 0, kind: input, shape index: {}]   ;;  %s2099_s1 = inlined_call_operand.vmem [shape: f32[2,64,16], index: 1, kind: input, shape index: {}]   ;;  %s2100_s2 = inlined_call_operand.hbm [shape: f32[2,4,256], index: 2, kind: output, shape index: {}]  }
   0x1   :  { %9 = vsyncpa [#allocation3 + $0x1], 0  ;;  %s1739_s9 = smov 0   ;;  %s1741_s10 = smov 0  }
   0x2   :  { %s1743_s11 = smov 0   ;;  %s1745_s12 = smov 0  }
   0x3   :  { %s1747_s13 = smov 0   ;;  %s1749_s14 = smov 0  }
   0x4 LB: > { %s1462_s15 = sadd.s32 4294967295, %s1720_s14   ;;  %s1463_s16 = sadd.s32 4294967294, %s1720_s14   ;;  %s1720_s14 = sphi %s1749_s14, %s15_s14   ;;  %s1716_s13 = sphi %s1747_s13, %s2107_s13   ;;  %s1712_s12 = sphi %s1745_s12, %s2106_s12   ;;  %s1708_s11 = sphi %s1743_s11, %s2105_s11   ;;  %s1704_s10 = sphi %s1741_s10, %s2104_s10   ;;  %s1700_s9 = sphi %s1739_s9, %s2103_s9  }
   0x5   : > { %s27_s17 = sadd.s32 1, %s1716_s13  ;;  %s90_s18 = sadd.s32 1, %s1708_s11 }
   0x6   : > { %p29_p0 = scmp.ge.s32.totalorder %s27_s17, 2  ;;  %p100_p1 = scmp.ne.s32.totalorder %s1708_s11, %s1704_s10 }
   0x7   : > { %p101_p2 = scmp.eq.s32.totalorder %s1462_s15, 1  ;;  %p106_p3 = scmp.ne.s32.totalorder %s1704_s10, %s1700_s9 }
   0x8   : > { %s2109_s17 = smov (%p29_p0, %s27_s17), 0  ;;  %p107_p5 = scmp.eq.s32.totalorder %s1463_s16, 1 }
   0x9   : > { %p1779_p4 = por %p101_p2, %p100_p1  ;;  %s85_s20 = ssub.s32 %s1716_s13, %s2109_s17 }
   0xa   : > { %p1466_p6 = scmp.ge.s32.totalorder %s1720_s14, 1  ;;  %p88_p7 = scmp.eq.s32.totalorder %s85_s20, 0 }
   0xb   : > { %p1786_p8 = por %p107_p5, %p106_p3  ;;  %p146_p9 = scmp.lt.s32.totalorder %s1720_s14, 3 }
   0xc   : > { %s1792_s22 = scalar_select %p88_p7, %s1708_s11, %s90_s18  }
   0xd   : > { %p147_p10 = pnand %p1466_p6, %p146_p9 }
   0xe   : > { %p178_p11 = scmp.lt.s32.totalorder (!%p147_p10), %s1712_s12, 1  ;;  %v1722_v0 = vmov (!%p147_p10), 0.0   ;;  %v208_v4 = vlaneseq (!%p147_p10)  ;;  %vm397_vm0 = vcmask (!%p147_p10), 130048   ;;  %s174_s4 = sand.u32 (!%p147_p10), 1, %s1704_s10  }
   0xf   : > { %150 = sbr.rel (%p147_p10) target bundleno = 407 (0x197), region = 28  ;;  %490 = vmatprep.mubr.f32.mxu1 (!%p147_p10), %v1722_v0  ;;  %925 = vmatprep.mubr.f32.mxu0 (!%p147_p10), %v1722_v0  ;;  %s1467_s5 = sshll.u32 (!%p147_p10), %s174_s4, 3 }
  0x10   : > { %v1801_v7 = vshrl.u32 (!%p147_p10), %v208_v4, 7  ;;  %s1479_s6 = sshll.u32 (!%p147_p10), %s1712_s12, 7  ;;  %s176_s7 = scalar_lea.vmem (!%p147_p10), [#allocation2], %s1467_s5 }
  0x11   : > { %s1374_s8 = sshll.u32 (!%p147_p10), %s176_s7, 4  ;;  %s2051_s18 = scalar_lea.hbm (!%p147_p10), %s2100_s2, %s1479_s6  ;;  %s2053_s8 = int_to_ptr.vmem [resolvable:$true] %s1374_s8 }
  0x12   : > { %v217_v13 = vsub.s32 (!%p147_p10), 3, %v1801_v7  ;;  %v213_v14 = vsub.s32 (!%p147_p10), 1, %v1801_v7  ;;  %v1822_v20 = vadd.s32 (!%p147_p10), 8, %v1801_v7  ;;  %s1358_s20 = scalar_lea.sflag (!%p147_p10), [#allocation3], %s174_s4 }
  0x16   : > { %s179_s23 = scalar_select %p178_p11, %s1712_s12, 1 }
  0x17   : > { %s1723_s12 = smov [#allocation2]  }
  0x18   : > { %s1477_s24 = sshll.u32 %s179_s23, 2  ;;  %s1478_s28 = sshll.u32 %s179_s23, 6 }
  0x19   : > { %s185_s27 = scalar_lea.vmem %s2098_s0, %s1477_s24  ;;  %s1806_s3 = scalar_lea.vmem %s2099_s1, %s1478_s28 }
  0x1a   : > { %v193_v1 = vld [vmem:[%s185_s27] sm:$0xf]  ;;  %v390_v15 = vld [vmem:[%s1806_s3 + $0x8] sm:$0xff]  ;;  %v391_v18 = vld [vmem:[%s1806_s3 + $0x10] sm:$0xff]  ;;  %s1642_s23 = scalar_lea.vmem %s2053_s8, 128  ;;  %s1646_s24 = sshll.u32 %s1723_s12, 4  ;;  %s1647_s24 = int_to_ptr.vmem [resolvable:$false] %s1646_s24 }
  0x1b   : > { %v194_v2 = vmax.f32 %v193_v1, 0.0  ;;  %v389_v11 = vld [vmem:[%s1806_s3] sm:$0xff]  ;;  %v402_v22 = vsel %vm397_vm0, %v390_v15, 0  ;;  %v392_v23 = vld [vmem:[%s1806_s3 + $0x18] sm:$0xff]  ;;  %v405_v30 = vsel %vm397_vm0, %v391_v18, 0  ;;  %v394_v4 = vld [vmem:[%s1806_s3 + $0x28] sm:$0xff]  ;;  %p1643_p12 = scmp.ne.s32.totalorder %s2053_s8, %s1642_s23  ;;  %p1649_p1 = scmp.lt.s32.totalorder %s2053_s8, %s1647_s24 }
  0x1c   : > { %v399_v17 = vsel %vm397_vm0, %v389_v11, 0  ;;  %v408_v33 = vsel %vm397_vm0, %v392_v23, 0  ;;  %v1839_v37 = vand.u32 4294901760, %v402_v22  ;;  %v1847_v42 = vand.u32 4294901760, %v405_v30  ;;  %v393_v52 = vld [vmem:[%s1806_s3 + $0x20] sm:$0xff]  ;;  %s1648_s25 = scalar_lea.vmem %s1647_s24, 256 }
  0x1d   : > { %v195_v3 = vmin.f32 %v194_v2, 1.0  ;;  %v1830_v27 = vand.u32 4294901760, %v399_v17  ;;  %v1849_v43 = vand.u32 4294901760, %v408_v33  ;;  %v411_v62 = vsel %vm397_vm0, %v393_v52, 0  ;;  %p1644_p13 = pnand %p1643_p12, %p1779_p4  ;;  %p1650_p2 = scmp.lt.s32.totalorder %s1648_s25, %s1642_s23 }
  0x1e   : > { %v1855_v49 = vsub.f32 %v402_v22, %v1839_v37  ;;  %v1864_v61 = vsub.f32 %v405_v30, %v1847_v42 }
  0x1f   : > { %v196_v5 = vmul.f32 15.0, %v195_v3  ;;  %v1845_v39 = vsub.f32 %v399_v17, %v1830_v27  ;;  %v1871_v15 = vsub.f32 %v408_v33, %v1849_v43  ;;  %v414_v17 = vsel %vm397_vm0, %v394_v4, 0  ;;  %p1645_p0 = pneg %p1644_p13  ;;  %p1651_p3 = por %p1650_p2, %p1649_p1 }
  0x20   : > { %v515_v23 = vand.u32 4294901760, %v1864_v61 }
  0x21   : > { %v197_v6 = vfloor.f32 %v196_v5  ;;  %v493_v51 = vand.u32 4294901760, %v1845_v39  ;;  %p1652_p5 = pnand %p1651_p3, %p1645_p0 }
  0x23   : > { %v1584_v8 = vtrunc.f32 %v197_v6  ;;  %v1808_v9 = vsub.f32 %v196_v5, %v197_v6  ;;  %v494_v5 = vsub.f32 %v1845_v39, %v493_v51  ;;  %v504_v6 = vand.u32 4294901760, %v1855_v49 }
  0x25   : > { %v1585_v10 = vcvt.f32.s32 %v1584_v8  ;;  %v1812_v12 = vsub.f32 1.0, %v1808_v9  ;;  %v282_v28 = vrot.slane %v1808_v9, %v217_v13  ;;  %v278_v36 = vrot.slane %v1808_v9, %v213_v14 }
  0x27   : > { %vm199_vm1 = vcmp.gt.s32.totalorder %v1585_v10, 0  ;;  %v239_v21 = vrot.slane %v1812_v12, %v217_v13  ;;  %v235_v29 = vrot.slane %v1812_v12, %v213_v14  ;;  %v292_v40 = vrot.slane %v282_v28, %v213_v14 }
  0x28   : > { %v200_v16 = vsel %vm199_vm1, %v1585_v10, 0  ;;  %v288_v48 = vrot.slane %v278_v36, %v213_v14  ;;  %v505_v28 = vsub.f32 %v1855_v49, %v504_v6 }
  0x29   : > { %vm201_vm2 = vcmp.lt.s32.totalorder %v200_v16, 15  ;;  %v249_v35 = vrot.slane %v239_v21, %v213_v14  ;;  %v245_v41 = vrot.slane %v235_v29, %v213_v14 }
  0x2a   : > { %v1819_v19 = vsel %vm201_vm2, %v200_v16, 15  ;;  %v1873_v16 = vand.u32 4294901760, %v411_v62 }
  0x2b   : > { %v203_v24 = vadd.s32 1, %v1819_v19  ;;  %v218_v25 = vrot.slane %v1819_v19, %v217_v13  ;;  %v214_v26 = vrot.slane %v1819_v19, %v213_v14 }
  0x2d   : > { %vm204_vm3 = vcmp.lt.s32.totalorder %v203_v24, 15  ;;  %v226_v31 = vrot.slane %v218_v25, %v213_v14  ;;  %v222_v32 = vrot.slane %v214_v26, %v213_v14  ;;  %v495_v26 = vand.u32 4294901760, %v494_v5 }
  0x2e   : > { %v1836_v34 = vsel %vm204_vm3, %v203_v24, 15 }
  0x2f   : > { %vm228_vm4 = vcmp.eq.s32.totalorder %v1801_v7, %v226_v31  ;;  %vm230_vm5 = vcmp.eq.s32.totalorder %v1822_v20, %v226_v31  ;;  %v261_v38 = vrot.slane %v1836_v34, %v217_v13  ;;  %vm227_vm6 = vcmp.eq.s32.totalorder %v1801_v7, %v222_v32 }
  0x30   : > { %vm229_vm7 = vcmp.eq.s32.totalorder %v1822_v20, %v222_v32  ;;  %v257_v45 = vrot.slane %v1836_v34, %v213_v14  ;;  %v251_v46 = vsel %vm228_vm4, %v249_v35, 0.0  ;;  %v253_v47 = vsel %vm230_vm5, %v249_v35, 0.0 }
  0x31   : > { %v269_v44 = vrot.slane %v261_v38, %v213_v14  ;;  %v250_v55 = vsel %vm227_vm6, %v245_v41, 0.0  ;;  %v252_v56 = vsel %vm229_vm7, %v245_v41, 0.0  ;;  %v395_v41 = vld [vmem:[%s1806_s3 + $0x30] sm:$0xff]  ;;  %vm1341_vm4 = vcmask 1041409  }
  0x32   : > { %v265_v50 = vrot.slane %v257_v45, %v213_v14  ;;  %vm1343_vm5 = vcmask 1045509   ;;  %vm1346_vm6 = vcmask 1042434   ;;  %vm1348_vm7 = vcmask 1046534  }
  0x33   : > { %vm271_vm8 = vcmp.eq.s32.totalorder %v1801_v7, %v269_v44  ;;  %vm273_vm9 = vcmp.eq.s32.totalorder %v1822_v20, %v269_v44 }
  0x34   : > { %v294_v53 = vsel %vm271_vm8, %v292_v40, 0.0  ;;  %v296_v54 = vsel %vm273_vm9, %v292_v40, 0.0  ;;  %vm270_vm10 = vcmp.eq.s32.totalorder %v1801_v7, %v265_v50  ;;  %vm272_vm11 = vcmp.eq.s32.totalorder %v1822_v20, %v265_v50 }
  0x35   : > { %v298_v57 = vadd.f32 %v294_v53, %v251_v46  ;;  %v300_v58 = vadd.f32 %v296_v54, %v253_v47  ;;  %v293_v59 = vsel %vm270_vm10, %v288_v48, 0.0  ;;  %v295_v60 = vsel %vm272_vm11, %v288_v48, 0.0 }
  0x36   : > { %v297_v2 = vadd.f32 %v293_v59, %v250_v55  ;;  %v299_v3 = vadd.f32 %v295_v60, %v252_v56  ;;  %v1889_v40 = vand.u32 4294901760, %v414_v17  ;;  %v526_v46 = vand.u32 4294901760, %v1871_v15  ;;  %v396_v56 = vld [vmem:[%s1806_s3 + $0x38] sm:$0xff] }
  0x37   : > { %v422_v63 = vand.u32 4294901760, %v298_v57  ;;  %v426_v1 = vand.u32 4294901760, %v300_v58  ;;  %v1895_v47 = vsub.f32 %v411_v62, %v1873_v16  ;;  %v506_v48 = vand.u32 4294901760, %v505_v28 }
  0x38   : > { %v424_v13 = vand.u32 4294901760, %v297_v2  ;;  %v428_v14 = vand.u32 4294901760, %v299_v3  ;;  %v516_v53 = vsub.f32 %v1864_v61, %v515_v23  ;;  %v417_v55 = vsel %vm397_vm0, %v395_v41, 0 }
  0x39   : > { %v1480_v8 = vpack.c.bf16 %v426_v1, %v422_v63  ;;  %v580_v10 = vsub.f32 %v298_v57, %v422_v63  ;;  %v592_v11 = vsub.f32 %v300_v58, %v426_v1  ;;  %v537_v59 = vand.u32 4294901760, %v1895_v47 }
  0x3a   : > { %v1876_v18 = vsub.f32 %v297_v2, %v424_v13  ;;  %v1879_v24 = vpack.c.bf16 %v428_v14, %v424_v13  ;;  %v1881_v25 = vsub.f32 %v299_v3, %v428_v14  ;;  %v527_v60 = vsub.f32 %v1871_v15, %v526_v46 }
  0x3b   : > { %1481 = vmatprep.subr.bf16.mxu1 %v1480_v8  ;;  %1493 = vmatprep.subr.bf16.mxu0 %v1480_v8  ;;  %v581_v21 = vand.u32 4294901760, %v580_v10  ;;  %v593_v22 = vand.u32 4294901760, %v592_v11  ;;  %v1488_v57 = vpack.c.bf16 %v592_v11, %v580_v10  ;;  %v1905_v62 = vsub.f32 %v414_v17, %v1889_v40 }
  0x3c   : > { %v587_v32 = vand.u32 4294901760, %v1876_v18  ;;  %1483 = vmatpush1.bf16.msra.mxu1 %v1879_v24  ;;  %1495 = vmatpush1.bf16.msra.mxu0 %v1879_v24  ;;  %v599_v33 = vand.u32 4294901760, %v1881_v25  ;;  %v1907_v63 = vand.u32 4294901760, %v417_v55  ;;  %v420_v1 = vsel %vm397_vm0, %v396_v56, 0 }
  0x3d   : > { %v582_v29 = vsub.f32 %v580_v10, %v581_v21  ;;  %v594_v30 = vsub.f32 %v592_v11, %v593_v22  ;;  %v1496_v31 = vpack.c.bf16 %v593_v22, %v581_v21  ;;  %v538_v2 = vsub.f32 %v1895_v47, %v537_v59 }
  0x3e   : > { %v588_v38 = vsub.f32 %v1876_v18, %v587_v32  ;;  %v600_v44 = vsub.f32 %v1881_v25, %v599_v33  ;;  %v1498_v45 = vpack.c.bf16 %v599_v33, %v587_v32  ;;  %v528_v3 = vand.u32 4294901760, %v527_v60 }
  0x3f   : > { %v583_v35 = vand.u32 4294901760, %v582_v29  ;;  %v595_v36 = vand.u32 4294901760, %v594_v30  ;;  %1497 = vmatprep.subr.bf16.mxu0 %v1496_v31  ;;  %496 = vmatmul.mubr.f32.vlgmr.msra.gmra.mrb[0].mxu1 %v495_v26  ;;  %v548_v4 = vand.u32 4294901760, %v1905_v62  ;;  %v1915_v5 = vsub.f32 %v417_v55, %v1907_v63 }
  0x40   : > { %929 = vmatmul.mubr.f32.vlgmr.msra.gmra.mrb[0].mxu0 %v493_v51  ;;  %v589_v52 = vand.u32 4294901760, %v588_v38  ;;  %501 = vmatprep.mubr.f32.mxu1 %v1722_v0  ;;  %v601_v54 = vand.u32 4294901760, %v600_v44  ;;  %v517_v51 = vand.u32 4294901760, %v516_v53  ;;  %v1490_v28 = vpack.c.bf16 %v1881_v25, %v1876_v18 }
  0x41   : > { %v1484_v50 = vpack.c.bf16 %v595_v36, %v583_v35  ;;  %934 = vmatprep.mubr.f32.mxu0 %v1722_v0  ;;  %1499 = vmatpush1.bf16.msra.mxu0 %v1498_v45  ;;  %v549_v10 = vsub.f32 %v1905_v62, %v548_v4  ;;  %v559_v11 = vand.u32 4294901760, %v1915_v5  ;;  %vm1351_vm8 = vcmask 1043459  }
  0x42   : > { %v1486_v58 = vpack.c.bf16 %v601_v54, %v589_v52  ;;  %1501 = vmatprep.subr.bf16.mxu0 %v1480_v8  ;;  %v539_v8 = vand.u32 4294901760, %v538_v2  ;;  %vm1353_vm9 = vcmask 1047559  }
  0x43   : > { %1485 = vmatprep.subr.bf16.mxu1 %v1484_v50  ;;  %507 = vmatmul.mubr.f32.gmra.mrb[2].mxu1 %v506_v48  ;;  %v550_v14 = vand.u32 4294901760, %v549_v10  ;;  %v560_v17 = vsub.f32 %v1915_v5, %v559_v11 }
  0x44   : > { %938 = vmatmul.mubr.f32.gmra.mrb[2].mxu0 %v504_v6  ;;  %1487 = vmatpush1.bf16.msra.mxu1 %v1486_v58  ;;  %v1917_v6 = vand.u32 4294901760, %v420_v1 }
  0x45   : > { %512 = vmatprep.mubr.f32.mxu1 %v1722_v0  ;;  %943 = vmatprep.mubr.f32.mxu0 %v1722_v0  ;;  %v561_v22 = vand.u32 4294901760, %v560_v17 }
  0x46   : > { %1489 = vmatprep.subr.bf16.mxu1 %v1488_v57  ;;  %v1924_v13 = vsub.f32 %v420_v1, %v1917_v6 }
  0x47   : > { %518 = vmatmul.mubr.f32.gmra.mrb[4].mxu1 %v517_v51 }
  0x48   : > { %947 = vmatmul.mubr.f32.gmra.mrb[4].mxu0 %v515_v23  ;;  %523 = vmatprep.mubr.f32.mxu1 %v1722_v0  ;;  %v570_v21 = vand.u32 4294901760, %v1924_v13 }
  0x49   : > { %952 = vmatprep.mubr.f32.mxu0 %v1722_v0 }
  0x4a   : > { %v571_v23 = vsub.f32 %v1924_v13, %v570_v21 }
  0x4b   : > { %529 = vmatmul.mubr.f32.gmra.mrb[6].mxu1 %v528_v3 }
  0x4c   : > { %956 = vmatmul.mubr.f32.gmra.mrb[6].mxu0 %v526_v46  ;;  %534 = vmatprep.mubr.f32.mxu1 %v1722_v0  ;;  %v572_v26 = vand.u32 4294901760, %v571_v23 }
  0x4d   : > { %961 = vmatprep.mubr.f32.mxu0 %v1722_v0 }
  0x4f   : > { %540 = vmatmul.mubr.f32.gmra.mrb[8].mxu1 %v539_v8 }
  0x50   : > { %965 = vmatmul.mubr.f32.gmra.mrb[8].mxu0 %v537_v59  ;;  %545 = vmatprep.mubr.f32.mxu1 %v1722_v0 }
  0x51   : > { %970 = vmatprep.mubr.f32.mxu0 %v1722_v0 }
  0x53   : > { %551 = vmatmul.mubr.f32.gmra.mrb[10].mxu1 %v550_v14 }
  0x54   : > { %974 = vmatmul.mubr.f32.gmra.mrb[10].mxu0 %v548_v4  ;;  %556 = vmatprep.mubr.f32.mxu1 %v1722_v0 }
  0x55   : > { %979 = vmatprep.mubr.f32.mxu0 %v1722_v0 }
  0x57   : > { %562 = vmatmul.mubr.f32.gmra.mrb[12].mxu1 %v561_v22 }
  0x58   : > { %983 = vmatmul.mubr.f32.gmra.mrb[12].mxu0 %v559_v11  ;;  %567 = vmatprep.mubr.f32.mxu1 %v1722_v0 }
  0x59   : > { %988 = vmatprep.mubr.f32.mxu0 %v1722_v0 }
  0x5b   : > { %573 = vmatmul.mubr.f32.gmra.mrb[14].mxu1 %v572_v26 }
  0x5c   : > { %992 = vmatmul.mubr.f32.gmra.mrb[14].mxu0 %v570_v21  ;;  %663 = vmatprep.mubr.f32.mxu1 %v1722_v0 }
  0x5d   : > { %1074 = vmatprep.mubr.f32.mxu0 %v1722_v0 }
  0x5f   : > { %665 = vmatmul.mubr.f32.vlgmr.msra.gmra.mrb[0].mxu1 %v1830_v27 }
  0x60   : > { %1076 = vmatmul.mubr.f32.vlgmr.msra.gmra.mrb[0].mxu0 %v1830_v27  ;;  %670 = vmatprep.mubr.f32.mxu1 %v1722_v0 }
  0x61   : > { %1081 = vmatprep.mubr.f32.mxu0 %v1722_v0  ;;  %1491 = vmatpush1.bf16.msra.mxu1 %v1490_v28 }
  0x62   : > { %1503 = vmatpush1.bf16.msra.mxu0 %v1879_v24 }
  0x63   : > { %672 = vmatmul.mubr.f32.gmra.mrb[2].mxu1 %v1839_v37 }
  0x64   : > { %1083 = vmatmul.mubr.f32.gmra.mrb[2].mxu0 %v1839_v37  ;;  %677 = vmatprep.mubr.f32.mxu1 %v1722_v0 }
  0x65   : > { %1088 = vmatprep.mubr.f32.mxu0 %v1722_v0 }
  0x67   : > { %679 = vmatmul.mubr.f32.gmra.mrb[4].mxu1 %v1847_v42 }
  0x68   : > { %1090 = vmatmul.mubr.f32.gmra.mrb[4].mxu0 %v1847_v42  ;;  %684 = vmatprep.mubr.f32.mxu1 %v1722_v0 }
  0x69   : > { %1095 = vmatprep.mubr.f32.mxu0 %v1722_v0 }
  0x6b   : > { %686 = vmatmul.mubr.f32.gmra.mrb[6].mxu1 %v1849_v43 }
  0x6c   : > { %1097 = vmatmul.mubr.f32.gmra.mrb[6].mxu0 %v1849_v43  ;;  %691 = vmatprep.mubr.f32.mxu1 %v1722_v0 }
  0x6d   : > { %1102 = vmatprep.mubr.f32.mxu0 %v1722_v0 }
  0x6f   : > { %693 = vmatmul.mubr.f32.gmra.mrb[8].mxu1 %v1873_v16 }
  0x70   : > { %1104 = vmatmul.mubr.f32.gmra.mrb[8].mxu0 %v1873_v16  ;;  %698 = vmatprep.mubr.f32.mxu1 %v1722_v0 }
  0x71   : > { %1109 = vmatprep.mubr.f32.mxu0 %v1722_v0 }
  0x73   : > { %700 = vmatmul.mubr.f32.gmra.mrb[10].mxu1 %v1889_v40 }
  0x74   : > { %1111 = vmatmul.mubr.f32.gmra.mrb[10].mxu0 %v1889_v40  ;;  %705 = vmatprep.mubr.f32.mxu1 %v1722_v0 }
  0x75   : > { %1116 = vmatprep.mubr.f32.mxu0 %v1722_v0 }
  0x77   : > { %707 = vmatmul.mubr.f32.gmra.mrb[12].mxu1 %v1907_v63 }
  0x78   : > { %1118 = vmatmul.mubr.f32.gmra.mrb[12].mxu0 %v1907_v63  ;;  %712 = vmatprep.mubr.f32.mxu1 %v1722_v0 }
  0x79   : > { %1123 = vmatprep.mubr.f32.mxu0 %v1722_v0 }
  0x7b   : > { %714 = vmatmul.mubr.f32.gmra.mrb[14].mxu1 %v1917_v6 }
  0x7c   : > { %1125 = vmatmul.mubr.f32.gmra.mrb[14].mxu0 %v1917_v6  ;;  %792 = vmatprep.mubr.f32.mxu1 %v1722_v0 }
  0x7d   : > { %1199 = vmatprep.mubr.f32.mxu0 %v1722_v0 }
  0x7f   : > { %795 = vmatmul.mubr.f32.vlgmr.msra.gmra.mrb[0].mxu1 %v1845_v39 }
  0x80   : > { %1201 = vmatmul.mubr.f32.vlgmr.msra.gmra.mrb[0].mxu0 %v1830_v27  ;;  %800 = vmatprep.mubr.f32.mxu1 %v1722_v0  ;;  %v303_v27 = vsub.s32 0, %v1801_v7 }
  0x81   : > { %1206 = vmatprep.mubr.f32.mxu0 %v1722_v0 }
  0x82   : > { %v304_v39 = vrot.slane %v1819_v19, %v303_v27 }
  0x83   : > { %803 = vmatmul.mubr.f32.gmra.mrb[2].mxu1 %v1855_v49 }
  0x84   : > { %1208 = vmatmul.mubr.f32.gmra.mrb[2].mxu0 %v1839_v37  ;;  %808 = vmatprep.mubr.f32.mxu1 %v1722_v0  ;;  %v307_v37 = vsub.s32 2, %v1801_v7 }
  0x85   : > { %1213 = vmatprep.mubr.f32.mxu0 %v1722_v0 }
  0x86   : > { %v350_v49 = vrot.slane %v1836_v34, %v307_v37  ;;  %v328_v18 = vrot.slane %v1812_v12, %v307_v37  ;;  %v370_v25 = vrot.slane %v1808_v9, %v307_v37 }
  0x87   : > { %811 = vmatmul.mubr.f32.gmra.mrb[4].mxu1 %v1864_v61  ;;  %v324_v61 = vrot.slane %v1812_v12, %v303_v27 }
  0x88   : > { %1215 = vmatmul.mubr.f32.gmra.mrb[4].mxu0 %v1847_v42  ;;  %816 = vmatprep.mubr.f32.mxu1 %v1722_v0  ;;  %v346_v42 = vrot.slane %v1836_v34, %v303_v27  ;;  %v358_v29 = vrot.slane %v350_v49, %v303_v27  ;;  %v338_v31 = vrot.slane %v328_v18, %v303_v27 }
  0x89   : > { %1220 = vmatprep.mubr.f32.mxu0 %v1722_v0  ;;  %v334_v30 = vrot.slane %v324_v61, %v303_v27  ;;  %v380_v34 = vrot.slane %v370_v25, %v303_v27 }
  0x8a   : > { %vm360_vm1 = vcmp.eq.s32.totalorder %v1801_v7, %v358_v29  ;;  %vm362_vm3 = vcmp.eq.s32.totalorder %v1822_v20, %v358_v29 }
  0x8b   : > { %819 = vmatmul.mubr.f32.gmra.mrb[6].mxu1 %v1871_v15  ;;  %v312_v15 = vrot.slane %v304_v39, %v303_v27  ;;  %v382_v44 = vsel %vm360_vm1, %v380_v34, 0.0 }
  0x8c   : > { %1222 = vmatmul.mubr.f32.gmra.mrb[6].mxu0 %v1849_v43  ;;  %824 = vmatprep.mubr.f32.mxu1 %v1722_v0  ;;  %v308_v43 = vrot.slane %v1819_v19, %v307_v37 }
  0x8d   : > { %1227 = vmatprep.mubr.f32.mxu0 %v1722_v0  ;;  %vm317_vm12 = vcmp.eq.s32.totalorder %v1801_v7, %v312_v15  ;;  %vm319_vm15 = vcmp.eq.s32.totalorder %v1822_v20, %v312_v15 }
  0x8e   : > { %v316_v24 = vrot.slane %v308_v43, %v303_v27  ;;  %v341_v36 = vsel %vm319_vm15, %v334_v30, 0.0 }
  0x8f   : > { %827 = vmatmul.mubr.f32.gmra.mrb[8].mxu1 %v1895_v47  ;;  %v384_v47 = vsel %vm362_vm3, %v380_v34, 0.0 }
  0x90   : > { %1229 = vmatmul.mubr.f32.gmra.mrb[8].mxu0 %v1873_v16  ;;  %832 = vmatprep.mubr.f32.mxu1 %v1722_v0  ;;  %v366_v16 = vrot.slane %v1808_v9, %v303_v27  ;;  %vm318_vm14 = vcmp.eq.s32.totalorder %v1801_v7, %v316_v24  ;;  %vm320_vm2 = vcmp.eq.s32.totalorder %v1822_v20, %v316_v24  ;;  %v339_v9 = vsel %vm317_vm12, %v334_v30, 0.0 }
  0x91   : > { %1234 = vmatprep.mubr.f32.mxu0 %v1722_v0  ;;  %v340_v35 = vsel %vm318_vm14, %v338_v31, 0.0  ;;  %v342_v46 = vsel %vm320_vm2, %v338_v31, 0.0 }
  0x92   : > { %v376_v19 = vrot.slane %v366_v16, %v303_v27  ;;  %v2026_v52 = vadd.f32 %v382_v44, %v340_v35  ;;  %v2028_v54 = vadd.f32 %v384_v47, %v342_v46 }
  0x93   : > { %835 = vmatmul.mubr.f32.gmra.mrb[10].mxu1 %v1905_v62 }
  0x94   : > { %1236 = vmatmul.mubr.f32.gmra.mrb[10].mxu0 %v1889_v40  ;;  %840 = vmatprep.mubr.f32.mxu1 %v1722_v0 }
  0x95   : > { %1241 = vmatprep.mubr.f32.mxu0 %v1722_v0 }
  0x97   : > { %843 = vmatmul.mubr.f32.gmra.mrb[12].mxu1 %v1915_v5 }
  0x98   : > { %1243 = vmatmul.mubr.f32.gmra.mrb[12].mxu0 %v1907_v63  ;;  %848 = vmatprep.mubr.f32.mxu1 %v1722_v0 }
  0x99   : > { %1248 = vmatprep.mubr.f32.mxu0 %v1722_v0  ;;  %v354_v0 = vrot.slane %v346_v42, %v303_v27 }
  0x9b   : > { %851 = vmatmul.mubr.f32.gmra.mrb[14].mxu1 %v1924_v13  ;;  %vm359_vm13 = vcmp.eq.s32.totalorder %v1801_v7, %v354_v0  ;;  %vm361_vm0 = vcmp.eq.s32.totalorder %v1822_v20, %v354_v0 }
  0x9c   : > { %1250 = vmatmul.mubr.f32.gmra.mrb[14].mxu0 %v1917_v6  ;;  %v381_v32 = vsel %vm359_vm13, %v376_v19, 0.0  ;;  %v383_v38 = vsel %vm361_vm0, %v376_v19, 0.0 }
  0x9d   : > { %v2022_v50 = vadd.f32 %v381_v32, %v339_v9  ;;  %v2024_v7 = vadd.f32 %v383_v38, %v341_v36 }
 0x152   : > { %v796_v12 = vpop.f32.mrb[0].mxu1 }
 0x153   : > { %v1202_v33 = vpop.f32.mrb[0].mxu0  ;;  %v798_v41 = vpop.f32.mrb[1].mxu1 }
 0x154   : > { %v1504_v40 = vadd.f32 %v1202_v33, %v796_v12  ;;  %v1204_v45 = vpop.f32.mrb[1].mxu0 }
 0x155   : > { %v1505_v48 = vadd.f32 %v1204_v45, %v798_v41 }
 0x156   : > { %v804_v20 = vpop.f32.mrb[2].mxu1  ;;  %v1256_v59 = vmul.f32 %v1504_v40, %v2022_v50 }
 0x157   : > { %v1209_v53 = vpop.f32.mrb[2].mxu0  ;;  %v806_v56 = vpop.f32.mrb[3].mxu1  ;;  %v1257_v60 = vmul.f32 %v1505_v48, %v2026_v52 }
 0x158   : > { %v1506_v55 = vadd.f32 %v1209_v53, %v804_v20  ;;  %v1211_v57 = vpop.f32.mrb[3].mxu0 }
 0x159   : > { %v1507_v58 = vadd.f32 %v1211_v57, %v806_v56 }
 0x15a   : > { %v1258_v51 = vmul.f32 %v1506_v55, %v2024_v7  ;;  %v812_v63 = vpop.f32.mrb[4].mxu1 }
 0x15b   : > { %v1259_v62 = vmul.f32 %v1507_v58, %v2028_v54  ;;  %v1216_v1 = vpop.f32.mrb[4].mxu0  ;;  %v814_v4 = vpop.f32.mrb[5].mxu1 }
 0x15c   : > { %v1272_v2 = vadd.f32 %v1258_v51, %v1256_v59  ;;  %v1508_v3 = vadd.f32 %v1216_v1, %v812_v63  ;;  %v1218_v5 = vpop.f32.mrb[5].mxu0 }
 0x15d   : > { %v1279_v6 = vadd.f32 %v1259_v62, %v1257_v60  ;;  %v1509_v8 = vadd.f32 %v1218_v5, %v814_v4 }
 0x15e   : > { %v1273_v10 = vrot.slane %v1272_v2, 4  ;;  %v820_v13 = vpop.f32.mrb[6].mxu1  ;;  %v1260_v37 = vmul.f32 %v1508_v3, %v2022_v50 }
 0x15f   : > { %v1280_v11 = vrot.slane %v1279_v6, 4  ;;  %v1223_v14 = vpop.f32.mrb[6].mxu0  ;;  %v822_v22 = vpop.f32.mrb[7].mxu1  ;;  %v1261_v43 = vmul.f32 %v1509_v8, %v2026_v52 }
 0x160   : > { %v1274_v17 = vadd.f32 %v1273_v10, %v1272_v2  ;;  %v1510_v21 = vadd.f32 %v1223_v14, %v820_v13  ;;  %v1225_v23 = vpop.f32.mrb[7].mxu0 }
 0x161   : > { %v1281_v26 = vadd.f32 %v1280_v11, %v1279_v6  ;;  %v1511_v28 = vadd.f32 %v1225_v23, %v822_v22 }
 0x162   : > { %v1275_v27 = vrot.slane %v1274_v17, 2  ;;  %v1262_v39 = vmul.f32 %v1510_v21, %v2024_v7  ;;  %v828_v61 = vpop.f32.mrb[8].mxu1 }
 0x163   : > { %v1282_v42 = vrot.slane %v1281_v26, 2  ;;  %v1263_v49 = vmul.f32 %v1511_v28, %v2028_v54  ;;  %v1230_v15 = vpop.f32.mrb[8].mxu0  ;;  %v830_v24 = vpop.f32.mrb[9].mxu1 }
 0x164   : > { %v1276_v0 = vadd.f32 %v1275_v27, %v1274_v17  ;;  %v1286_v16 = vadd.f32 %v1262_v39, %v1260_v37  ;;  %v1512_v18 = vadd.f32 %v1230_v15, %v828_v61  ;;  %v1232_v25 = vpop.f32.mrb[9].mxu0 }
 0x165   : > { %v1283_v29 = vadd.f32 %v1282_v42, %v1281_v26  ;;  %v1293_v30 = vadd.f32 %v1263_v49, %v1261_v43  ;;  %v1513_v19 = vadd.f32 %v1232_v25, %v830_v24 }
 0x166   : > { %v1277_v31 = vrot.slane %v1276_v0, 1  ;;  %v1287_v34 = vrot.slane %v1286_v16, 4  ;;  %v836_v32 = vpop.f32.mrb[10].mxu1  ;;  %v1264_v48 = vmul.f32 %v1512_v18, %v2022_v50 }
 0x167   : > { %v1284_v9 = vrot.slane %v1283_v29, 1  ;;  %v1294_v12 = vrot.slane %v1293_v30, 4  ;;  %v1237_v33 = vpop.f32.mrb[10].mxu0  ;;  %v838_v40 = vpop.f32.mrb[11].mxu1  ;;  %v1265_v56 = vmul.f32 %v1513_v19, %v2026_v52 }
 0x168   : > { %v1278_v35 = vadd.f32 %v1277_v31, %v1276_v0  ;;  %v1288_v36 = vadd.f32 %v1287_v34, %v1286_v16  ;;  %v1514_v38 = vadd.f32 %v1237_v33, %v836_v32  ;;  %v1239_v41 = vpop.f32.mrb[11].mxu0 }
 0x169   : > { %v1285_v44 = vadd.f32 %v1284_v9, %v1283_v29  ;;  %v1295_v45 = vadd.f32 %v1294_v12, %v1293_v30  ;;  %v1515_v46 = vadd.f32 %v1239_v41, %v838_v40 }
 0x16a   : > { %v1289_v47 = vrot.slane %v1288_v36, 2  ;;  %v1266_v20 = vmul.f32 %v1514_v38, %v2024_v7  ;;  %v844_v58 = vpop.f32.mrb[12].mxu1 }
 0x16b   : > { %v1336_v53 = vcombine.low %v1278_v35, %v1285_v44  ;;  %v1296_v55 = vrot.slane %v1295_v45, 2  ;;  %v1267_v57 = vmul.f32 %v1515_v46, %v2028_v54  ;;  %v1244_v59 = vpop.f32.mrb[12].mxu0  ;;  %v846_v63 = vpop.f32.mrb[13].mxu1 }
 0x16c   : > { %v1290_v51 = vadd.f32 %v1289_v47, %v1288_v36  ;;  %v1300_v60 = vadd.f32 %v1266_v20, %v1264_v48  ;;  %v1516_v62 = vadd.f32 %v1244_v59, %v844_v58  ;;  %v1246_v1 = vpop.f32.mrb[13].mxu0 }
 0x16d   : > { %v1297_v2 = vadd.f32 %v1296_v55, %v1295_v45  ;;  %v1307_v3 = vadd.f32 %v1267_v57, %v1265_v56  ;;  %v1517_v4 = vadd.f32 %v1246_v1, %v846_v63 }
 0x16e   : > { %v1291_v5 = vrot.slane %v1290_v51, 1  ;;  %v1301_v6 = vrot.slane %v1300_v60, 4  ;;  %v852_v11 = vpop.f32.mrb[14].mxu1  ;;  %v1268_v39 = vmul.f32 %v1516_v62, %v2022_v50 }
 0x16f   : > { %v1298_v8 = vrot.slane %v1297_v2, 1  ;;  %v1308_v10 = vrot.slane %v1307_v3, 4  ;;  %v1251_v13 = vpop.f32.mrb[14].mxu0  ;;  %v854_v22 = vpop.f32.mrb[15].mxu1  ;;  %v1269_v61 = vmul.f32 %v1517_v4, %v2026_v52 }
 0x170   : > { %v1292_v14 = vadd.f32 %v1291_v5, %v1290_v51  ;;  %v1302_v17 = vadd.f32 %v1301_v6, %v1300_v60  ;;  %v1518_v21 = vadd.f32 %v1251_v13, %v852_v11  ;;  %v1253_v23 = vpop.f32.mrb[15].mxu0 }
 0x171   : > { %v1299_v26 = vadd.f32 %v1298_v8, %v1297_v2  ;;  %v1309_v28 = vadd.f32 %v1308_v10, %v1307_v3  ;;  %v1519_v27 = vadd.f32 %v1253_v23, %v854_v22 }
 0x172   : > { %v1303_v37 = vrot.slane %v1302_v17, 2  ;;  %v1270_v42 = vmul.f32 %v1518_v21, %v2024_v7 }
 0x173   : > { %v1337_v43 = vcombine.low %v1292_v14, %v1299_v26  ;;  %v1310_v49 = vrot.slane %v1309_v28, 2  ;;  %v1271_v15 = vmul.f32 %v1519_v27, %v2028_v54 }
 0x174   : > { %v1304_v0 = vadd.f32 %v1303_v37, %v1302_v17  ;;  %v1314_v16 = vadd.f32 %v1270_v42, %v1268_v39 }
 0x175   : > { %v1340_v18 = vrot.slane %v1337_v43, 7  ;;  %v1311_v24 = vadd.f32 %v1310_v49, %v1309_v28  ;;  %v1321_v25 = vadd.f32 %v1271_v15, %v1269_v61 }
 0x176   : > { %v1305_v29 = vrot.slane %v1304_v0, 1  ;;  %v1315_v30 = vrot.slane %v1314_v16, 4 }
 0x177   : > { %v1312_v19 = vrot.slane %v1311_v24, 1  ;;  %v1322_v50 = vrot.slane %v1321_v25, 4  ;;  %v1342_v31 = vsel %vm1341_vm4, %v1340_v18, %v1336_v53 }
 0x178   : > { %v1306_v7 = vadd.f32 %v1305_v29, %v1304_v0  ;;  %v1316_v34 = vadd.f32 %v1315_v30, %v1314_v16  ;;  %v1344_v9 = vsel %vm1343_vm5, %v1340_v18, %v1342_v31 }
 0x179   : > { %v1313_v12 = vadd.f32 %v1312_v19, %v1311_v24  ;;  %v1323_v52 = vadd.f32 %v1322_v50, %v1321_v25 }
 0x17a   : > { %v1317_v32 = vrot.slane %v1316_v34, 2 }
 0x17b   : > { %v1338_v54 = vcombine.low %v1306_v7, %v1313_v12  ;;  %v1324_v33 = vrot.slane %v1323_v52, 2 }
 0x17c   : > { %v1318_v35 = vadd.f32 %v1317_v32, %v1316_v34 }
 0x17d   : > { %v1345_v36 = vrot.slane %v1338_v54, 6  ;;  %v1325_v38 = vadd.f32 %v1324_v33, %v1323_v52 }
 0x17e   : > { %v1319_v40 = vrot.slane %v1318_v35, 1 }
 0x17f   : > { %v1326_v41 = vrot.slane %v1325_v38, 1  ;;  %v1347_v44 = vsel %vm1346_vm6, %v1345_v36, %v1344_v9 }
 0x180   : > { %v1320_v45 = vadd.f32 %v1319_v40, %v1318_v35  ;;  %v1349_v46 = vsel %vm1348_vm7, %v1345_v36, %v1347_v44 }
 0x181   : > { %v1327_v47 = vadd.f32 %v1326_v41, %v1325_v38 }
 0x183   : > { %v1339_v48 = vcombine.low %v1320_v45, %v1327_v47 }
 0x185   : > { %v1350_v20 = vrot.slane %v1339_v48, 5 }
 0x187   : > { %v1352_v53 = vsel %vm1351_vm8, %v1350_v20, %v1349_v46 }
 0x188   : > { %v1354_v55 = vsel %vm1353_vm9, %v1350_v20, %v1352_v53 }
 0x189   : > { %1356 = vst [vmem:[%s176_s7] sm:$0xff] %v1354_v55 }
 0x18a   : > { %1655 = shalt.err (!%p1652_p5)
}
 0x18b   : > { %s1656_s26 = scalar_lea.hbm %s2051_s18, 128  ;;  %s1660_s29 = scalar_lea.hbm %s2100_s2, 256 }
 0x18c   : > { %p1657_p6 = scmp.ne.s32.totalorder %s2051_s18, %s1656_s26  ;;  %p1661_p10 = scmp.lt.u32.totalorder %s2051_s18, %s2100_s2 }
 0x18d   : > { %p1662_p11 = scmp.lt.u32.totalorder %s1660_s29, %s1656_s26  ;;  %p1664_p13 = scmp.lt.u32.totalorder %s1656_s26, %s2051_s18 }
 0x18e   : > { %p1658_p7 = pnand %p1657_p6, %p1779_p4 }
 0x18f   : > { %p1663_p12 = por %p1662_p11, %p1661_p10 }
 0x190   : > { %p1659_p9 = pneg %p1658_p7 }
 0x191   : > { %p1665_p0 = por %p1664_p13, %p1663_p12 }
 0x193   : > { %p1666_p1 = pnand %p1665_p0, %p1659_p9 }
 0x195   : > { %1669 = shalt.err (!%p1666_p1)
}
 0x196   : > { %1586 = dma.vmem_to_hbm [thread:$0]  (%p1779_p4), %s2053_s8, 128, %s2051_s18, %s1358_s20  }
 0x197 PF: > { %p1592_p2 = scmp.ge.s32.totalorder %s1720_s14, 2  ;;  %s1386_s4 = sand.u32 1, %s1700_s9  }
 0x198   : > { %s1387_s5 = scalar_lea.sflag [#allocation3], %s1386_s4 }
 0x199   : > { %p1589_p3 = pnand %p1592_p2, %p1786_p8 }
 0x19b   : > { %1695 = dma.done.wait (!%p1589_p3), %s1387_s5, 128  }
 0x19c   : > { %1697 = vsyncadd (!%p1589_p3), %s1387_s5, 4294967168  ;;  %s15_s14 = sadd.s32 1, %s1720_s14   ;;  %s2103_s9 = smov %s1704_s10 }
 0x19d   : > { %p12_p5 = scmp.ge.s32.totalorder %s15_s14, 4   ;;  %s2104_s10 = smov %s1708_s11 }
 0x19e   : > { %s2105_s11 = smov %s1792_s22  ;;  %s2106_s12 = smov %s1716_s13 }
 0x19f   : > { %s2107_s13 = smov %s2109_s17  ;;  %14 = sbr.rel (!%p12_p5) target bundleno = 4 (0x4), region = 66 }
 0x1a6   :  { %1392 = vsyncpa [#allocation3], 1 }
 0x1a7   :  { %1394 = vsyncpa [#allocation3 + $0x1], 1 }

</bundles_post_ra>
